<compile_context>
chip_gen: v7x
topology: tpu7x:2x2x1
jax: 0.10.0
libtpu: 0.0.40
codegen_flags: <defaults>
</compile_context>

<pallas_src>
import functools

import jax
import jax.numpy as jnp
from jax import lax
from jax.experimental import pallas as pl
from jax.experimental.pallas import tpu as pltpu

KERNEL_MUL = 2.0
KERNEL_NUM = 5
_EPS = 1e-14
_BW_DENOM = KERNEL_MUL ** (KERNEL_NUM // 2)
_HEADROOM_BYTES = 16 * 2**20
_MIN_VMEM_LIMIT = 32 * 2**20


# ---------------------------------------------------------------------------
# VMEM budgeting
# ---------------------------------------------------------------------------
def _vmem_budget_bytes():
    """Physical per-core VMEM minus headroom; conservative 64 MiB fallback."""
    try:
        phys = int(pltpu.get_tpu_info().vmem_capacity_bytes)
    except Exception:  # info unavailable -> assume smallest generation (v7x)
        phys = 64 * 2**20
    return max(_MIN_VMEM_LIMIT, phys - _HEADROOM_BYTES)


def _fused_footprint_bytes(n, d, itemsize):
    # resident operand + f32 copy + gram/l2/acc/mask temporaries (~6 * N^2 f32)
    return n * d * (itemsize + 4) + 6 * n * n * 4 + (2 << 20)


def _tiled_footprint_bytes(n_pad, d, itemsize, tm):
    resident = n_pad * d * (itemsize + 4) + 2 * n_pad * 4   # operand + sq scratch
    stripe = 8 * tm * n_pad * 4                             # gram/l2/acc/mask temps
    return resident + stripe + (2 << 20)


def _sublane_pack(dtype):
    # rows per VMEM sublane tile: 8 for 4-byte, 16 for 2-byte, 32 for 1-byte
    return 8 * max(1, 4 // jnp.dtype(dtype).itemsize)


# ---------------------------------------------------------------------------
# Shared in-kernel math
# ---------------------------------------------------------------------------
def _bandwidths(sum_sq_x, sum_sq_y, gxx, gyy, gxy, nx, ny):
    """Per-call bandwidths from closed-form block L2 sums (no N^2 reductions).

    sum(L2_blk) = nb*sum(sq_rows) + na*sum(sq_cols) - 2*sum(gram_blk), and the
    gram block sums are outer products of the per-domain column sums.
    """
    l2sum_xx = 2.0 * float(nx) * sum_sq_x - 2.0 * gxx
    l2sum_yy = 2.0 * float(ny) * sum_sq_y - 2.0 * gyy
    l2sum_xy = float(ny) * sum_sq_x + float(nx) * sum_sq_y - 2.0 * gxy
    bw_xx = l2sum_xx / float((2 * nx) ** 2 - 2 * nx) / _BW_DENOM
    bw_yy = l2sum_yy / float((2 * ny) ** 2 - 2 * ny) / _BW_DENOM
    bw_xy = l2sum_xy / float((nx + ny) ** 2 - (nx + ny)) / _BW_DENOM
    return bw_xx, bw_yy, bw_xy


def _weighted_multi_kernel_sum(l2, row_in_y, col_in_y,
                               bw_xx, bw_yy, bw_xy, nx, ny, valid=None):
    """sum over the block matrix of  weight * sum_i exp(-l2 / bw_blk_i).

    weight = 1/nx^2 (xx block), 1/ny^2 (yy), -1/(nx*ny) (xy and yx; by symmetry
    this yields the -2*mean(K_xy) term).  `valid` zeroes padded rows/cols.
    """
    yy = jnp.logical_and(row_in_y, col_in_y)
    cross = jnp.logical_xor(row_in_y, col_in_y)
    weight = jnp.where(yy, 1.0 / (ny * ny),
                       jnp.where(cross, -1.0 / (nx * ny), 1.0 / (nx * nx)))
    if valid is not None:
        weight = jnp.where(valid, weight, 0.0)
    acc = jnp.zeros_like(l2)
    for i in range(KERNEL_NUM):
        m = KERNEL_MUL ** i
        ninv_xx = -1.0 / (bw_xx * m + _EPS)   # scalar reciprocals, one per bw
        ninv_yy = -1.0 / (bw_yy * m + _EPS)
        ninv_xy = -1.0 / (bw_xy * m + _EPS)
        mult = jnp.where(yy, ninv_yy, jnp.where(cross, ninv_xy, ninv_xx))
        acc = acc + jnp.exp(l2 * mult)        # elementwise accumulate (VPU)
    return jnp.sum(acc * weight)              # single XLU reduction


def _fused_math(t, o_ref, nx, ny):
    n = nx + ny
    tf = t.astype(jnp.float32)
    sq = jnp.sum(tf * tf, axis=1, keepdims=True)            # (N, 1) row norms
    # One Gram matmul for all three blocks, contracting last dims (no explicit
    # transpose); operand stays in its native dtype for full MXU rate.
    gram = lax.dot_general(t, t, (((1,), (1,)), ((), ())),
                           preferred_element_type=jnp.float32)
    l2 = jnp.maximum(sq + sq.T - 2.0 * gram, 0.0)           # clamp cancellation

    row_idx = lax.broadcasted_iota(jnp.int32, (n, 1), 0)
    col_idx = lax.broadcasted_iota(jnp.int32, (1, n), 1)
    row_in_y = row_idx >= nx
    col_in_y = col_idx >= nx

    # Closed-form per-call bandwidth sums: O(N*D), no L2 block slicing.
    xmask = jnp.where(row_in_y, 0.0, 1.0)                   # (N, 1)
    ymask = 1.0 - xmask
    sum_sq_x = jnp.sum(sq * xmask)
    sum_sq_y = jnp.sum(sq * ymask)
    sx = jnp.sum(tf * xmask, axis=0, keepdims=True)         # (1, D)
    sy = jnp.sum(tf * ymask, axis=0, keepdims=True)
    bw_xx, bw_yy, bw_xy = _bandwidths(
        sum_sq_x, sum_sq_y,
        jnp.sum(sx * sx), jnp.sum(sy * sy), jnp.sum(sx * sy), nx, ny)

    o_ref[0, 0] = _weighted_multi_kernel_sum(
        l2, row_in_y, col_in_y, bw_xx, bw_yy, bw_xy, nx, ny)


# ---------------------------------------------------------------------------
# Fused single-shot kernel (whole problem resident in VMEM)
# ---------------------------------------------------------------------------
def _mmd_fused_dma_kernel(x_hbm, y_hbm, o_ref, buf, sem, *, nx, ny):
    # In-kernel concat: two DMAs into adjacent row ranges of one VMEM scratch.
    cp_x = pltpu.make_async_copy(x_hbm, buf.at[pl.ds(0, nx)], sem.at[0])
    cp_y = pltpu.make_async_copy(y_hbm, buf.at[pl.ds(nx, ny)], sem.at[1])
    cp_x.start()
    cp_y.start()
    cp_x.wait()
    cp_y.wait()
    _fused_math(buf[...], o_ref, nx, ny)


def _mmd_fused_plain_kernel(total_ref, o_ref, *, nx, ny):
    _fused_math(total_ref[...], o_ref, nx, ny)


def _mmd_fused(x, y, budget):
    nx, d = x.shape
    ny = y.shape[0]
    n = nx + ny
    itemsize = jnp.dtype(x.dtype).itemsize
    vmem_limit = int(min(budget, max(_MIN_VMEM_LIMIT,
                                     _fused_footprint_bytes(n, d, itemsize))))
    params = pltpu.CompilerParams(vmem_limit_bytes=vmem_limit)
    out_shape = jax.ShapeDtypeStruct((1, 1), jnp.float32)
    out_spec = pl.BlockSpec(memory_space=pltpu.SMEM)

    if nx % _sublane_pack(x.dtype) == 0:
        # Fast path: x/y stay in HBM; the concat is two in-kernel DMAs.
        out = pl.pallas_call(
            functools.partial(_mmd_fused_dma_kernel, nx=nx, ny=ny),
            out_shape=out_shape,
            in_specs=[pl.BlockSpec(memory_space=pl.ANY),
                      pl.BlockSpec(memory_space=pl.ANY)],
            out_specs=out_spec,
            scratch_shapes=[pltpu.VMEM((n, d), x.dtype),
                            pltpu.SemaphoreType.DMA((2,))],
            compiler_params=params,
        )(x, y)
    else:
        # nx lands mid sublane-tile: concat once in the wrapper instead of an
        # unaligned-destination DMA.
        total = jnp.concatenate([x, y], axis=0)
        out = pl.pallas_call(
            functools.partial(_mmd_fused_plain_kernel, nx=nx, ny=ny),
            out_shape=out_shape,
            in_specs=[pl.BlockSpec(memory_space=pltpu.VMEM)],
            out_specs=out_spec,
            compiler_params=params,
        )(total)
    return out[0, 0]


# ---------------------------------------------------------------------------
# Tiled fallback (Gram/L2 footprint exceeds the VMEM budget)
# ---------------------------------------------------------------------------
def _mmd_tiled_kernel(total_ref, o_ref, sq_ref, sqt_ref, bw_ref, acc_ref,
                      *, nx, ny, n_pad, tm):
    i = pl.program_id(0)
    n = nx + ny

    @pl.when(i == 0)
    def _init():
        tf = total_ref[...].astype(jnp.float32)
        sq = jnp.sum(tf * tf, axis=1, keepdims=True)         # (n_pad, 1)
        sq_ref[...] = sq
        sqt_ref[...] = sq.T                                   # (1, n_pad)
        ridx = lax.broadcasted_iota(jnp.int32, (n_pad, 1), 0)
        xm = jnp.where(ridx < nx, 1.0, 0.0)
        ym = jnp.where(jnp.logical_and(ridx >= nx, ridx < n), 1.0, 0.0)
        sum_sq_x = jnp.sum(sq * xm)
        sum_sq_y = jnp.sum(sq * ym)
        sx = jnp.sum(tf * xm, axis=0, keepdims=True)
        sy = jnp.sum(tf * ym, axis=0, keepdims=True)
        bw_xx, bw_yy, bw_xy = _bandwidths(
            sum_sq_x, sum_sq_y,
            jnp.sum(sx * sx), jnp.sum(sy * sy), jnp.sum(sx * sy), nx, ny)
        bw_ref[0] = bw_xx
        bw_ref[1] = bw_yy
        bw_ref[2] = bw_xy
        acc_ref[0] = jnp.float32(0.0)

    r0 = pl.multiple_of(i * tm, tm)
    rows = total_ref[pl.ds(r0, tm), :]                        # (tm, D) native dtype
    gram = lax.dot_general(rows, total_ref[...], (((1,), (1,)), ((), ())),
                           preferred_element_type=jnp.float32)  # (tm, n_pad)
    l2 = jnp.maximum(sq_ref[pl.ds(r0, tm), :] + sqt_ref[...] - 2.0 * gram, 0.0)

    grow = r0 + lax.broadcasted_iota(jnp.int32, (tm, 1), 0)   # global row ids
    gcol = lax.broadcasted_iota(jnp.int32, (1, n_pad), 1)
    valid = jnp.logical_and(grow < n, gcol < n)               # mask zero padding
    partial = _weighted_multi_kernel_sum(
        l2, grow >= nx, gcol >= nx, bw_ref[0], bw_ref[1], bw_ref[2],
        nx, ny, valid=valid)
    acc_ref[0] = acc_ref[0] + partial

    @pl.when(i == pl.num_programs(0) - 1)
    def _finalize():
        o_ref[0, 0] = acc_ref[0]


def _mmd_tiled(x, y, budget, tile_rows=None):
    nx, d = x.shape
    ny = y.shape[0]
    n = nx + ny
    itemsize = jnp.dtype(x.dtype).itemsize

    if tile_rows is None:
        tm = 512                      # prefer large row stripes (per review)
        while tm > 8 and _tiled_footprint_bytes(n, d, itemsize, tm) > budget:
            tm //= 2
    else:
        tm = int(tile_rows)
    n_pad = pl.cdiv(n, tm) * tm
    grid = n_pad // tm

    # Wrapper concat + zero padding; negligible O(N*D) next to the O(N^2)
    # work at the sizes where the tiled path is required.
    total = jnp.concatenate([x, y], axis=0)
    if n_pad > n:
        total = jnp.concatenate(
            [total, jnp.zeros((n_pad - n, d), total.dtype)], axis=0)

    vmem_limit = int(min(budget, max(
        _MIN_VMEM_LIMIT, _tiled_footprint_bytes(n_pad, d, itemsize, tm))))
    out = pl.pallas_call(
        functools.partial(_mmd_tiled_kernel, nx=nx, ny=ny, n_pad=n_pad, tm=tm),
        out_shape=jax.ShapeDtypeStruct((1, 1), jnp.float32),
        grid=(grid,),
        in_specs=[pl.BlockSpec(memory_space=pltpu.VMEM)],     # operand resident
        out_specs=pl.BlockSpec(memory_space=pltpu.SMEM),
        scratch_shapes=[pltpu.VMEM((n_pad, 1), jnp.float32),
                        pltpu.VMEM((1, n_pad), jnp.float32),
                        pltpu.SMEM((3,), jnp.float32),
                        pltpu.SMEM((1,), jnp.float32)],
        compiler_params=pltpu.CompilerParams(
            dimension_semantics=("arbitrary",),   # sequential SMEM accumulator
            vmem_limit_bytes=vmem_limit),
    )(total)
    return out[0, 0]


# ---------------------------------------------------------------------------
# Public entry points
# ---------------------------------------------------------------------------
def mmd_loss_pallas(x, y, *, force_tiled=False, tile_rows=None):
    """x: (Nx, D), y: (Ny, D) float arrays. Returns scalar MMD (float32)."""
    assert x.ndim == 2 and y.ndim == 2 and x.shape[1] == y.shape[1], \
        "x and y must be 2-D with the same feature dimension"
    assert x.dtype == y.dtype, "x and y must share a dtype"
    nx, d = x.shape
    ny = y.shape[0]
    itemsize = jnp.dtype(x.dtype).itemsize
    budget = _vmem_budget_bytes()
    if force_tiled or _fused_footprint_bytes(nx + ny, d, itemsize) > budget:
        return _mmd_tiled(x, y, budget, tile_rows)
    return _mmd_fused(x, y, budget)


class MMDLoss:
    """Thin wrapper mirroring the PyTorch module's forward (y_labels=None path)."""

    def __init__(self):
        self.kernel_mul = KERNEL_MUL
        self.kernel_num = KERNEL_NUM
        self.fix_sigma = None  # module has no learned parameters

    def __call__(self, x, y, x_labels=None, y_labels=None):
        if y_labels is None:
            mmd = mmd_loss_pallas(x, y)
            return mmd, ("03. mmd loss: ", jax.device_get(mmd))
        raise NotImplementedError(
            "Labeled MMD branch not implemented (ragged per-label grouping, "
            "undefined cfg.LOSSES.MMD_NEG_WEIGHT)."
        )


# ---------------------------------------------------------------------------
# Pure-JAX reference mirroring the PyTorch module line-by-line (for checking).
# ---------------------------------------------------------------------------
def _guassian_kernel_mean_ref(a, b):
    a = a.astype(jnp.float32)
    b = b.astype(jnp.float32)
    na, nb = a.shape[0], b.shape[0]
    n_samples = na + nb
    diff = a[:, None, :] - b[None, :, :]
    l2 = jnp.sum(diff * diff, axis=2)
    bandwidth = jnp.sum(l2) / (n_samples ** 2 - n_samples)
    bandwidth = bandwidth / (KERNEL_MUL ** (KERNEL_NUM // 2))
    kval = sum(
        jnp.exp(-l2 / (bandwidth * (KERNEL_MUL ** i) + _EPS))
        for i in range(KERNEL_NUM)
    )
    return jnp.mean(kval)


def _mmd_reference(x, y):
    return (
        _guassian_kernel_mean_ref(x, x)
        + _guassian_kernel_mean_ref(y, y)
        - 2.0 * _guassian_kernel_mean_ref(x, y)
    )


if __name__ == "__main__":
    key = jax.random.PRNGKey(0)
    kx, ky, kx2, ky2 = jax.random.split(key, 4)

    # Small shapes consistent with the module: 8 samples per domain, hidden=32.
    x = jax.random.normal(kx, (8, 32), dtype=jnp.float32)
    y = jax.random.normal(ky, (8, 32), dtype=jnp.float32) + 0.5

    loss_fn = MMDLoss()
    mmd, _log = loss_fn(x, y, None, None)
    mmd = jax.block_until_ready(mmd)
    ref = jax.block_until_ready(_mmd_reference(x, y))
    assert jnp.allclose(mmd, ref, rtol=1e-3, atol=1e-6), (mmd, ref)

    # Also exercise the tiled fallback (row padding + multi-stripe accumulation).
    x2 = jax.random.normal(kx2, (88, 64), dtype=jnp.float32)
    y2 = jax.random.normal(ky2, (72, 64), dtype=jnp.float32) + 0.25
    mmd2 = jax.block_until_ready(
        mmd_loss_pallas(x2, y2, force_tiled=True, tile_rows=64))
    ref2 = jax.block_until_ready(_mmd_reference(x2, y2))
    assert jnp.allclose(mmd2, ref2, rtol=1e-3, atol=1e-6), (mmd2, ref2)

    print("KERNEL_OK")
</pallas_src>

<mosaic_0001>
module attributes {stable_mosaic.version = 11 : i64} {
  func.func @_mmd_fused_dma_kernel(%arg0: memref<8x32xf32, #tpu.memory_space<any>>, %arg1: memref<8x32xf32, #tpu.memory_space<any>>, %arg2: memref<1x1xf32, #tpu.memory_space<smem>>, %arg3: memref<16x32xf32, #tpu.memory_space<vmem>>, %arg4: memref<2x!tpu.dma_semaphore, #tpu.memory_space<semaphore_mem>>) attributes {dimension_semantics = [], scalar_prefetch = 0 : i64, scratch_operands = 2 : i64, tpu.core_type = #tpu.core_type<tc>} {
    %c0_i32 = arith.constant 0 : i32
    %c0_i32_0 = arith.constant 0 : i32
    %c0_i32_1 = arith.constant 0 : i32
    %0 = tpu.memref_slice %arg3[%c0_i32_0, %c0_i32_1] : memref<16x32xf32, #tpu.memory_space<vmem>> -> memref<8x32xf32, #tpu.memory_space<vmem>>
    %1 = tpu.memref_slice %arg4[%c0_i32] : memref<2x!tpu.dma_semaphore, #tpu.memory_space<semaphore_mem>> -> memref<1x!tpu.dma_semaphore, #tpu.memory_space<semaphore_mem>>
    %2 = tpu.memref_squeeze %1 : memref<1x!tpu.dma_semaphore, #tpu.memory_space<semaphore_mem>> -> memref<!tpu.dma_semaphore, #tpu.memory_space<semaphore_mem>>
    tpu.enqueue_dma source(%arg0 : memref<8x32xf32, #tpu.memory_space<any>>) target(%0 : memref<8x32xf32, #tpu.memory_space<vmem>>) target_semaphore(%2 : memref<!tpu.dma_semaphore, #tpu.memory_space<semaphore_mem>>)
    %c1_i32 = arith.constant 1 : i32
    %c8_i32 = arith.constant 8 : i32
    %c0_i32_2 = arith.constant 0 : i32
    %3 = tpu.memref_slice %arg3[%c8_i32, %c0_i32_2] : memref<16x32xf32, #tpu.memory_space<vmem>> -> memref<8x32xf32, #tpu.memory_space<vmem>>
    %4 = tpu.memref_slice %arg4[%c1_i32] : memref<2x!tpu.dma_semaphore, #tpu.memory_space<semaphore_mem>> -> memref<1x!tpu.dma_semaphore, #tpu.memory_space<semaphore_mem>>
    %5 = tpu.memref_squeeze %4 : memref<1x!tpu.dma_semaphore, #tpu.memory_space<semaphore_mem>> -> memref<!tpu.dma_semaphore, #tpu.memory_space<semaphore_mem>>
    tpu.enqueue_dma source(%arg1 : memref<8x32xf32, #tpu.memory_space<any>>) target(%3 : memref<8x32xf32, #tpu.memory_space<vmem>>) target_semaphore(%5 : memref<!tpu.dma_semaphore, #tpu.memory_space<semaphore_mem>>)
    %c0_i32_3 = arith.constant 0 : i32
    %c0_i32_4 = arith.constant 0 : i32
    %c0_i32_5 = arith.constant 0 : i32
    %6 = tpu.memref_slice %arg3[%c0_i32_4, %c0_i32_5] : memref<16x32xf32, #tpu.memory_space<vmem>> -> memref<8x32xf32, #tpu.memory_space<vmem>>
    %7 = tpu.memref_slice %arg4[%c0_i32_3] : memref<2x!tpu.dma_semaphore, #tpu.memory_space<semaphore_mem>> -> memref<1x!tpu.dma_semaphore, #tpu.memory_space<semaphore_mem>>
    %8 = tpu.memref_squeeze %7 : memref<1x!tpu.dma_semaphore, #tpu.memory_space<semaphore_mem>> -> memref<!tpu.dma_semaphore, #tpu.memory_space<semaphore_mem>>
    tpu.wait_dma2 semaphore(%8 : memref<!tpu.dma_semaphore, #tpu.memory_space<semaphore_mem>>) src(%arg0 : memref<8x32xf32, #tpu.memory_space<any>>) dst(%6 : memref<8x32xf32, #tpu.memory_space<vmem>>)
    %c1_i32_6 = arith.constant 1 : i32
    %c8_i32_7 = arith.constant 8 : i32
    %c0_i32_8 = arith.constant 0 : i32
    %9 = tpu.memref_slice %arg3[%c8_i32_7, %c0_i32_8] : memref<16x32xf32, #tpu.memory_space<vmem>> -> memref<8x32xf32, #tpu.memory_space<vmem>>
    %10 = tpu.memref_slice %arg4[%c1_i32_6] : memref<2x!tpu.dma_semaphore, #tpu.memory_space<semaphore_mem>> -> memref<1x!tpu.dma_semaphore, #tpu.memory_space<semaphore_mem>>
    %11 = tpu.memref_squeeze %10 : memref<1x!tpu.dma_semaphore, #tpu.memory_space<semaphore_mem>> -> memref<!tpu.dma_semaphore, #tpu.memory_space<semaphore_mem>>
    tpu.wait_dma2 semaphore(%11 : memref<!tpu.dma_semaphore, #tpu.memory_space<semaphore_mem>>) src(%arg1 : memref<8x32xf32, #tpu.memory_space<any>>) dst(%9 : memref<8x32xf32, #tpu.memory_space<vmem>>)
    %c0 = arith.constant 0 : index
    %c0_9 = arith.constant 0 : index
    %12 = vector.load %arg3[%c0, %c0_9] : memref<16x32xf32, #tpu.memory_space<vmem>>, vector<16x32xf32>
    %13 = arith.mulf %12, %12 : vector<16x32xf32>
    %cst = arith.constant dense<0.000000e+00> : vector<16xf32>
    %14 = vector.multi_reduction <add>, %13, %cst [1] : vector<16x32xf32> to vector<16xf32>
    %15 = vector.shape_cast %14 : vector<16xf32> to vector<16x1xf32>
    %cst_10 = arith.constant dense<0.000000e+00> : vector<16x16xf32>
    %16 = tpu.matmul %12, %12, %cst_10 {dimension_numbers = #tpu.dot_dimension_numbers<[1], [1], [0], [0], [0, 0, 1, 0], [], []>} : vector<16x32xf32>, vector<16x32xf32>, vector<16x16xf32> -> vector<16x16xf32>
    %17 = tpu.transpose %15, [1, 0] : vector<16x1xf32> -> vector<1x16xf32>
    %18 = vector.broadcast %15 : vector<16x1xf32> to vector<16x16xf32>
    %19 = vector.broadcast %17 : vector<1x16xf32> to vector<16x16xf32>
    %20 = arith.addf %18, %19 : vector<16x16xf32>
    %cst_11 = arith.constant 2.000000e+00 : f32
    %21 = vector.broadcast %cst_11 : f32 to vector<16x16xf32>
    %22 = arith.mulf %21, %16 : vector<16x16xf32>
    %23 = arith.subf %20, %22 : vector<16x16xf32>
    %cst_12 = arith.constant 0.000000e+00 : f32
    %24 = vector.broadcast %cst_12 : f32 to vector<16x16xf32>
    %25 = arith.maximumf %23, %24 : vector<16x16xf32>
    %26 = tpu.iota {dimensions = array<i32: 0>} : vector<16x1xi32>
    %27 = tpu.iota {dimensions = array<i32: 1>} : vector<1x16xi32>
    %c8_i32_13 = arith.constant 8 : i32
    %28 = vector.broadcast %c8_i32_13 : i32 to vector<16x1xi32>
    %29 = arith.cmpi sge, %26, %28 : vector<16x1xi32>
    %c8_i32_14 = arith.constant 8 : i32
    %30 = vector.broadcast %c8_i32_14 : i32 to vector<1x16xi32>
    %31 = arith.cmpi sge, %27, %30 : vector<1x16xi32>
    %cst_15 = arith.constant 0.000000e+00 : f32
    %cst_16 = arith.constant 1.000000e+00 : f32
    %32 = vector.broadcast %cst_15 : f32 to vector<16x1xf32>
    %33 = vector.broadcast %cst_16 : f32 to vector<16x1xf32>
    %34 = arith.select %29, %32, %33 : vector<16x1xi1>, vector<16x1xf32>
    %cst_17 = arith.constant 1.000000e+00 : f32
    %35 = vector.broadcast %cst_17 : f32 to vector<16x1xf32>
    %36 = arith.subf %35, %34 : vector<16x1xf32>
    %37 = arith.mulf %15, %34 : vector<16x1xf32>
    %38 = vector.shape_cast %37 : vector<16x1xf32> to vector<1x16x1xf32>
    %cst_18 = arith.constant dense<0.000000e+00> : vector<1xf32>
    %39 = vector.multi_reduction <add>, %38, %cst_18 [1, 2] : vector<1x16x1xf32> to vector<1xf32>
    %40 = vector.shape_cast %39 : vector<1xf32> to vector<1x1x1xf32>
    %41 = vector.extract %40[0, 0, 0] : f32 from vector<1x1x1xf32>
    %42 = arith.mulf %15, %36 : vector<16x1xf32>
    %43 = vector.shape_cast %42 : vector<16x1xf32> to vector<1x16x1xf32>
    %cst_19 = arith.constant dense<0.000000e+00> : vector<1xf32>
    %44 = vector.multi_reduction <add>, %43, %cst_19 [1, 2] : vector<1x16x1xf32> to vector<1xf32>
    %45 = vector.shape_cast %44 : vector<1xf32> to vector<1x1x1xf32>
    %46 = vector.extract %45[0, 0, 0] : f32 from vector<1x1x1xf32>
    %47 = vector.broadcast %34 : vector<16x1xf32> to vector<16x32xf32>
    %48 = arith.mulf %12, %47 : vector<16x32xf32>
    %cst_20 = arith.constant dense<0.000000e+00> : vector<32xf32>
    %49 = vector.multi_reduction <add>, %48, %cst_20 [0] : vector<16x32xf32> to vector<32xf32>
    %50 = vector.shape_cast %49 : vector<32xf32> to vector<1x32xf32>
    %51 = vector.broadcast %36 : vector<16x1xf32> to vector<16x32xf32>
    %52 = arith.mulf %12, %51 : vector<16x32xf32>
    %cst_21 = arith.constant dense<0.000000e+00> : vector<32xf32>
    %53 = vector.multi_reduction <add>, %52, %cst_21 [0] : vector<16x32xf32> to vector<32xf32>
    %54 = vector.shape_cast %53 : vector<32xf32> to vector<1x32xf32>
    %55 = arith.mulf %50, %50 : vector<1x32xf32>
    %56 = vector.shape_cast %55 : vector<1x32xf32> to vector<1x1x32xf32>
    %cst_22 = arith.constant dense<0.000000e+00> : vector<1xf32>
    %57 = vector.multi_reduction <add>, %56, %cst_22 [1, 2] : vector<1x1x32xf32> to vector<1xf32>
    %58 = vector.shape_cast %57 : vector<1xf32> to vector<1x1x1xf32>
    %59 = vector.extract %58[0, 0, 0] : f32 from vector<1x1x1xf32>
    %60 = arith.mulf %54, %54 : vector<1x32xf32>
    %61 = vector.shape_cast %60 : vector<1x32xf32> to vector<1x1x32xf32>
    %cst_23 = arith.constant dense<0.000000e+00> : vector<1xf32>
    %62 = vector.multi_reduction <add>, %61, %cst_23 [1, 2] : vector<1x1x32xf32> to vector<1xf32>
    %63 = vector.shape_cast %62 : vector<1xf32> to vector<1x1x1xf32>
    %64 = vector.extract %63[0, 0, 0] : f32 from vector<1x1x1xf32>
    %65 = arith.mulf %50, %54 : vector<1x32xf32>
    %66 = vector.shape_cast %65 : vector<1x32xf32> to vector<1x1x32xf32>
    %cst_24 = arith.constant dense<0.000000e+00> : vector<1xf32>
    %67 = vector.multi_reduction <add>, %66, %cst_24 [1, 2] : vector<1x1x32xf32> to vector<1xf32>
    %68 = vector.shape_cast %67 : vector<1xf32> to vector<1x1x1xf32>
    %69 = vector.extract %68[0, 0, 0] : f32 from vector<1x1x1xf32>
    %cst_25 = arith.constant 1.600000e+01 : f32
    %70 = arith.mulf %cst_25, %41 : f32
    %cst_26 = arith.constant 2.000000e+00 : f32
    %71 = arith.mulf %cst_26, %59 : f32
    %72 = arith.subf %70, %71 : f32
    %cst_27 = arith.constant 1.600000e+01 : f32
    %73 = arith.mulf %cst_27, %46 : f32
    %cst_28 = arith.constant 2.000000e+00 : f32
    %74 = arith.mulf %cst_28, %64 : f32
    %75 = arith.subf %73, %74 : f32
    %cst_29 = arith.constant 8.000000e+00 : f32
    %76 = arith.mulf %cst_29, %41 : f32
    %cst_30 = arith.constant 8.000000e+00 : f32
    %77 = arith.mulf %cst_30, %46 : f32
    %78 = arith.addf %76, %77 : f32
    %cst_31 = arith.constant 2.000000e+00 : f32
    %79 = arith.mulf %cst_31, %69 : f32
    %80 = arith.subf %78, %79 : f32
    %cst_32 = arith.constant 2.400000e+02 : f32
    %81 = arith.divf %72, %cst_32 : f32
    %cst_33 = arith.constant 4.000000e+00 : f32
    %82 = arith.divf %81, %cst_33 : f32
    %cst_34 = arith.constant 2.400000e+02 : f32
    %83 = arith.divf %75, %cst_34 : f32
    %cst_35 = arith.constant 4.000000e+00 : f32
    %84 = arith.divf %83, %cst_35 : f32
    %cst_36 = arith.constant 2.400000e+02 : f32
    %85 = arith.divf %80, %cst_36 : f32
    %cst_37 = arith.constant 4.000000e+00 : f32
    %86 = arith.divf %85, %cst_37 : f32
    %87 = vector.broadcast %29 : vector<16x1xi1> to vector<16x16xi1>
    %88 = vector.broadcast %31 : vector<1x16xi1> to vector<16x16xi1>
    %89 = arith.andi %87, %88 : vector<16x16xi1>
    %90 = vector.broadcast %29 : vector<16x1xi1> to vector<16x16xi1>
    %91 = vector.broadcast %31 : vector<1x16xi1> to vector<16x16xi1>
    %92 = arith.xori %90, %91 : vector<16x16xi1>
    %cst_38 = arith.constant -1.562500e-02 : f32
    %cst_39 = arith.constant 1.562500e-02 : f32
    %93 = vector.broadcast %cst_38 : f32 to vector<16x16xf32>
    %94 = vector.broadcast %cst_39 : f32 to vector<16x16xf32>
    %95 = arith.select %92, %93, %94 : vector<16x16xi1>, vector<16x16xf32>
    %cst_40 = arith.constant 1.562500e-02 : f32
    %96 = vector.broadcast %cst_40 : f32 to vector<16x16xf32>
    %97 = arith.select %89, %96, %95 : vector<16x16xi1>, vector<16x16xf32>
    %cst_41 = arith.constant 0.000000e+00 : f32
    %98 = vector.broadcast %cst_41 : f32 to vector<16x16xf32>
    %cst_42 = arith.constant 1.000000e+00 : f32
    %99 = arith.mulf %82, %cst_42 : f32
    %cst_43 = arith.constant 9.99999982E-15 : f32
    %100 = arith.addf %99, %cst_43 : f32
    %cst_44 = arith.constant -1.000000e+00 : f32
    %101 = arith.divf %cst_44, %100 : f32
    %cst_45 = arith.constant 1.000000e+00 : f32
    %102 = arith.mulf %84, %cst_45 : f32
    %cst_46 = arith.constant 9.99999982E-15 : f32
    %103 = arith.addf %102, %cst_46 : f32
    %cst_47 = arith.constant -1.000000e+00 : f32
    %104 = arith.divf %cst_47, %103 : f32
    %cst_48 = arith.constant 1.000000e+00 : f32
    %105 = arith.mulf %86, %cst_48 : f32
    %cst_49 = arith.constant 9.99999982E-15 : f32
    %106 = arith.addf %105, %cst_49 : f32
    %cst_50 = arith.constant -1.000000e+00 : f32
    %107 = arith.divf %cst_50, %106 : f32
    %108 = vector.broadcast %107 : f32 to vector<16x16xf32>
    %109 = vector.broadcast %101 : f32 to vector<16x16xf32>
    %110 = arith.select %92, %108, %109 : vector<16x16xi1>, vector<16x16xf32>
    %111 = vector.broadcast %104 : f32 to vector<16x16xf32>
    %112 = arith.select %89, %111, %110 : vector<16x16xi1>, vector<16x16xf32>
    %113 = arith.mulf %25, %112 : vector<16x16xf32>
    %114 = math.exp %113 : vector<16x16xf32>
    %115 = arith.addf %98, %114 : vector<16x16xf32>
    %cst_51 = arith.constant 2.000000e+00 : f32
    %116 = arith.mulf %82, %cst_51 : f32
    %cst_52 = arith.constant 9.99999982E-15 : f32
    %117 = arith.addf %116, %cst_52 : f32
    %cst_53 = arith.constant -1.000000e+00 : f32
    %118 = arith.divf %cst_53, %117 : f32
    %cst_54 = arith.constant 2.000000e+00 : f32
    %119 = arith.mulf %84, %cst_54 : f32
    %cst_55 = arith.constant 9.99999982E-15 : f32
    %120 = arith.addf %119, %cst_55 : f32
    %cst_56 = arith.constant -1.000000e+00 : f32
    %121 = arith.divf %cst_56, %120 : f32
    %cst_57 = arith.constant 2.000000e+00 : f32
    %122 = arith.mulf %86, %cst_57 : f32
    %cst_58 = arith.constant 9.99999982E-15 : f32
    %123 = arith.addf %122, %cst_58 : f32
    %cst_59 = arith.constant -1.000000e+00 : f32
    %124 = arith.divf %cst_59, %123 : f32
    %125 = vector.broadcast %124 : f32 to vector<16x16xf32>
    %126 = vector.broadcast %118 : f32 to vector<16x16xf32>
    %127 = arith.select %92, %125, %126 : vector<16x16xi1>, vector<16x16xf32>
    %128 = vector.broadcast %121 : f32 to vector<16x16xf32>
    %129 = arith.select %89, %128, %127 : vector<16x16xi1>, vector<16x16xf32>
    %130 = arith.mulf %25, %129 : vector<16x16xf32>
    %131 = math.exp %130 : vector<16x16xf32>
    %132 = arith.addf %115, %131 : vector<16x16xf32>
    %cst_60 = arith.constant 4.000000e+00 : f32
    %133 = arith.mulf %82, %cst_60 : f32
    %cst_61 = arith.constant 9.99999982E-15 : f32
    %134 = arith.addf %133, %cst_61 : f32
    %cst_62 = arith.constant -1.000000e+00 : f32
    %135 = arith.divf %cst_62, %134 : f32
    %cst_63 = arith.constant 4.000000e+00 : f32
    %136 = arith.mulf %84, %cst_63 : f32
    %cst_64 = arith.constant 9.99999982E-15 : f32
    %137 = arith.addf %136, %cst_64 : f32
    %cst_65 = arith.constant -1.000000e+00 : f32
    %138 = arith.divf %cst_65, %137 : f32
    %cst_66 = arith.constant 4.000000e+00 : f32
    %139 = arith.mulf %86, %cst_66 : f32
    %cst_67 = arith.constant 9.99999982E-15 : f32
    %140 = arith.addf %139, %cst_67 : f32
    %cst_68 = arith.constant -1.000000e+00 : f32
    %141 = arith.divf %cst_68, %140 : f32
    %142 = vector.broadcast %141 : f32 to vector<16x16xf32>
    %143 = vector.broadcast %135 : f32 to vector<16x16xf32>
    %144 = arith.select %92, %142, %143 : vector<16x16xi1>, vector<16x16xf32>
    %145 = vector.broadcast %138 : f32 to vector<16x16xf32>
    %146 = arith.select %89, %145, %144 : vector<16x16xi1>, vector<16x16xf32>
    %147 = arith.mulf %25, %146 : vector<16x16xf32>
    %148 = math.exp %147 : vector<16x16xf32>
    %149 = arith.addf %132, %148 : vector<16x16xf32>
    %cst_69 = arith.constant 8.000000e+00 : f32
    %150 = arith.mulf %82, %cst_69 : f32
    %cst_70 = arith.constant 9.99999982E-15 : f32
    %151 = arith.addf %150, %cst_70 : f32
    %cst_71 = arith.constant -1.000000e+00 : f32
    %152 = arith.divf %cst_71, %151 : f32
    %cst_72 = arith.constant 8.000000e+00 : f32
    %153 = arith.mulf %84, %cst_72 : f32
    %cst_73 = arith.constant 9.99999982E-15 : f32
    %154 = arith.addf %153, %cst_73 : f32
    %cst_74 = arith.constant -1.000000e+00 : f32
    %155 = arith.divf %cst_74, %154 : f32
    %cst_75 = arith.constant 8.000000e+00 : f32
    %156 = arith.mulf %86, %cst_75 : f32
    %cst_76 = arith.constant 9.99999982E-15 : f32
    %157 = arith.addf %156, %cst_76 : f32
    %cst_77 = arith.constant -1.000000e+00 : f32
    %158 = arith.divf %cst_77, %157 : f32
    %159 = vector.broadcast %158 : f32 to vector<16x16xf32>
    %160 = vector.broadcast %152 : f32 to vector<16x16xf32>
    %161 = arith.select %92, %159, %160 : vector<16x16xi1>, vector<16x16xf32>
    %162 = vector.broadcast %155 : f32 to vector<16x16xf32>
    %163 = arith.select %89, %162, %161 : vector<16x16xi1>, vector<16x16xf32>
    %164 = arith.mulf %25, %163 : vector<16x16xf32>
    %165 = math.exp %164 : vector<16x16xf32>
    %166 = arith.addf %149, %165 : vector<16x16xf32>
    %cst_78 = arith.constant 1.600000e+01 : f32
    %167 = arith.mulf %82, %cst_78 : f32
    %cst_79 = arith.constant 9.99999982E-15 : f32
    %168 = arith.addf %167, %cst_79 : f32
    %cst_80 = arith.constant -1.000000e+00 : f32
    %169 = arith.divf %cst_80, %168 : f32
    %cst_81 = arith.constant 1.600000e+01 : f32
    %170 = arith.mulf %84, %cst_81 : f32
    %cst_82 = arith.constant 9.99999982E-15 : f32
    %171 = arith.addf %170, %cst_82 : f32
    %cst_83 = arith.constant -1.000000e+00 : f32
    %172 = arith.divf %cst_83, %171 : f32
    %cst_84 = arith.constant 1.600000e+01 : f32
    %173 = arith.mulf %86, %cst_84 : f32
    %cst_85 = arith.constant 9.99999982E-15 : f32
    %174 = arith.addf %173, %cst_85 : f32
    %cst_86 = arith.constant -1.000000e+00 : f32
    %175 = arith.divf %cst_86, %174 : f32
    %176 = vector.broadcast %175 : f32 to vector<16x16xf32>
    %177 = vector.broadcast %169 : f32 to vector<16x16xf32>
    %178 = arith.select %92, %176, %177 : vector<16x16xi1>, vector<16x16xf32>
    %179 = vector.broadcast %172 : f32 to vector<16x16xf32>
    %180 = arith.select %89, %179, %178 : vector<16x16xi1>, vector<16x16xf32>
    %181 = arith.mulf %25, %180 : vector<16x16xf32>
    %182 = math.exp %181 : vector<16x16xf32>
    %183 = arith.addf %166, %182 : vector<16x16xf32>
    %184 = arith.mulf %183, %97 : vector<16x16xf32>
    %185 = vector.shape_cast %184 : vector<16x16xf32> to vector<1x16x16xf32>
    %cst_87 = arith.constant dense<0.000000e+00> : vector<1xf32>
    %186 = vector.multi_reduction <add>, %185, %cst_87 [1, 2] : vector<1x16x16xf32> to vector<1xf32>
    %187 = vector.shape_cast %186 : vector<1xf32> to vector<1x1x1xf32>
    %188 = vector.extract %187[0, 0, 0] : f32 from vector<1x1x1xf32>
    %c0_88 = arith.constant 0 : index
    %c0_89 = arith.constant 0 : index
    %189 = memref.load %arg2[%c0_88, %c0_89] : memref<1x1xf32, #tpu.memory_space<smem>>
    memref.store %188, %arg2[%c0_88, %c0_89] : memref<1x1xf32, #tpu.memory_space<smem>>
    return
  }
}

</mosaic_0001>

<bundles_post_ra>
// kernel: tpu_custom_call.1
= control target key start
LH: loop header
LB: loop body
LE: loop exit
PB: predicated region body
PF: predicated region fallthrough
CT: control target
= control target key end

     0   :  { %7 = vsyncpa [#allocation5], 0  ;;  %s699_s9 = smov [#allocation2]   ;;  %s700_s11 = smov [#allocation2 + $0x8]   ;;  %s863_s0 = inlined_call_operand.hbm [shape: f32[8,32], index: 0, kind: input, shape index: {}]   ;;  %s864_s1 = inlined_call_operand.hbm [shape: f32[8,32], index: 1, kind: input, shape index: {}]   ;;  %s865_s2 = inlined_call_operand.hbm [shape: f32[1,1], index: 2, kind: output, shape index: {}]  }
   0x1   :  { %s15_s10 = sshll.u32 %s699_s9, 4  ;;  %s28_s12 = sshll.u32 %s700_s11, 4  ;;  %s16_s10 = int_to_ptr.vmem [resolvable:$true] %s15_s10  ;;  %s29_s12 = int_to_ptr.vmem [resolvable:$true] %s28_s12 }
   0x2   :  { %s639_s15 = scalar_lea.hbm %s863_s0, 128 }
   0x3   :  { %p640_p0 = scmp.ne.s32.totalorder %s863_s0, %s639_s15  ;;  %p643_p1 = scmp.lt.u32.totalorder %s639_s15, %s863_s0 }
   0x5   :  { %p645_p2 = pnand %p643_p1, %p640_p0 }
   0x7   :  { %648 = shalt.err (!%p645_p2)  }
   0x8   :  { %s649_s20 = scalar_lea.vmem %s16_s10, 128  ;;  %s653_s21 = scalar_lea.vmem %s16_s10, 256 }
   0x9   :  { %p650_p3 = scmp.ne.s32.totalorder %s16_s10, %s649_s20  ;;  %p654_p4 = scmp.lt.s32.totalorder %s16_s10, %s16_s10 }
   0xa   :  { %p655_p5 = scmp.lt.s32.totalorder %s653_s21, %s649_s20 }
   0xc   :  { %p656_p6 = por %p655_p5, %p654_p4 }
   0xe   :  { %p657_p7 = pnand %p656_p6, %p650_p3 }
  0x10   :  { %660 = shalt.err (!%p657_p7)  }
  0x11   :  { %18 = dma.hbm_to_vmem [thread:$0]  %s863_s0, 128, %s16_s10, [#allocation3] }
  0x12   :  { %s661_s26 = scalar_lea.hbm %s864_s1, 128 }
  0x13   :  { %p662_p8 = scmp.ne.s32.totalorder %s864_s1, %s661_s26  ;;  %p665_p9 = scmp.lt.u32.totalorder %s661_s26, %s864_s1 }
  0x15   :  { %p667_p10 = pnand %p665_p9, %p662_p8 }
  0x17   :  { %670 = shalt.err (!%p667_p10)  }
  0x18   :  { %s671_s3 = scalar_lea.vmem %s29_s12, 128  ;;  %p676_p12 = scmp.lt.s32.totalorder %s29_s12, %s16_s10 }
  0x19   :  { %p672_p11 = scmp.ne.s32.totalorder %s29_s12, %s671_s3  ;;  %p677_p13 = scmp.lt.s32.totalorder %s653_s21, %s671_s3 }
  0x1b   :  { %p678_p0 = por %p677_p13, %p676_p12 }
  0x1d   :  { %p679_p1 = pnand %p678_p0, %p672_p11 }
  0x1f   :  { %682 = shalt.err (!%p679_p1)  }
  0x20   :  { %31 = dma.hbm_to_vmem [thread:$0]  %s864_s1, 128, %s29_s12, [#allocation3 + $0x1] }
  0x21   :  { %693 = dma.done.wait [#allocation3], 128 }
  0x22   :  { %694 = vsyncadd [#allocation3], 4294967168 }
  0x23   :  { %695 = dma.done.wait [#allocation3 + $0x1], 128 }
  0x24   :  { %696 = vsyncadd [#allocation3 + $0x1], 4294967168  ;;  %vm41_vm0 = vcmask 261120   ;;  %v37_v0 = vld [vmem:[#allocation2] sm:$0xff]  ;;  %v38_v1 = vld [vmem:[#allocation2 + $0x8] sm:$0xff]  ;;  %vm237_vm2 = vcmask 253952  }
  0x25   :  { %vm536_vm1 = vmpackc.low %vm41_vm0, %vm41_vm0  ;;  %v39_v2 = vmul.f32 %v37_v0, %v37_v0  ;;  %v40_v3 = vmul.f32 %v38_v1, %v38_v1  ;;  %v535_v4 = vpack.c.bf16 %v38_v1, %v37_v0  ;;  %532 = vmatprep.mubr.msk.f32.mxu0 %vm41_vm0, %v37_v0  ;;  %v215_v7 = vmul.f32 0.0, %v38_v1 }
  0x26   :  { %v216_v8 = vsel %vm41_vm0, %v37_v0, 0.0  ;;  %v225_v11 = vmul.f32 0.0, %v37_v0  ;;  %v228_v14 = vsel %vm41_vm0, %v38_v1, 0.0  ;;  %vm187_vm3 = vcmask 7168  }
  0x27   :  { %v42_v5 = vsel %vm41_vm0, %v39_v2, 0.0  ;;  %537 = vmatprep.subr.msk.bf16.mxu0 %vm536_vm1, %v535_v4  ;;  %v45_v6 = vsel %vm41_vm0, %v40_v3, 0.0  ;;  %v217_v9 = vsel %vm41_vm0, %v215_v7, 0.0  ;;  %vm701_vm5 = vmmov 1  }
  0x28   :  { %43 = vadd.xlane.f32.xlu0 %v42_v5  ;;  %540 = vmatpush3.bf16.xpose.msk.msra.mxu0 %vm536_vm1, %v535_v4  ;;  %v218_v10 = vadd.f32 %v217_v9, %v216_v8  ;;  %v227_v13 = vsel %vm41_vm0, %v225_v11, 0.0  ;;  %vm477_vm7 = vcmask 130048  }
  0x29   :  { %v229_v16 = vadd.f32 %v228_v14, %v227_v13 }
  0x2a   :  { %v219_v12 = vrot.slane %v218_v10, 4 }
  0x2b   :  { %v230_v18 = vrot.slane %v229_v16, 4 }
  0x2c   :  { %46 = vadd.xlane.f32.xlu0 %v45_v6  ;;  %v220_v15 = vadd.f32 %v219_v12, %v218_v10 }
  0x2d   :  { %v231_v20 = vadd.f32 %v230_v18, %v229_v16 }
  0x2e   :  { %v221_v17 = vrot.slane %v220_v15, 2 }
  0x2f   :  { %533 = vmatmul.mubr.msk.f32.vlgmr.msra.gmra.mrb[0].mxu0 %vm41_vm0, %v38_v1  ;;  %v232_v22 = vrot.slane %v231_v20, 2 }
  0x30   :  { %v222_v19 = vadd.f32 %v221_v17, %v220_v15 }
  0x31   :  { %v233_v24 = vadd.f32 %v232_v22, %v231_v20 }
  0x32   :  { %v223_v21 = vrot.slane %v222_v19, 1 }
  0x33   :  { %v234_v26 = vrot.slane %v233_v24, 1 }
  0x34   :  { %v224_v23 = vadd.f32 %v223_v21, %v222_v19 }
  0x35   :  { %v235_v28 = vadd.f32 %v234_v26, %v233_v24 }
  0x36   :  { %v236_v25 = vmul.f32 %v224_v23, %v224_v23 }
  0x37   :  { %v259_v29 = vmul.f32 %v235_v28, %v224_v23  ;;  %v248_v31 = vmul.f32 %v235_v28, %v235_v28 }
  0x38   :  { %v238_v27 = vsel %vm237_vm2, %v236_v25, 0.0 }
  0x39   :  { %239 = vadd.xlane.f32.xlu0 %v238_v27  ;;  %v260_v30 = vsel %vm237_vm2, %v259_v29, 0.0  ;;  %v249_v32 = vsel %vm237_vm2, %v248_v31, 0.0 }
  0x3d   :  { %261 = vadd.xlane.f32.xlu0 %v260_v30 }
  0xb5   :  { %v753_v33 = vpop.xlane.xlu0 %43 }
  0xb6   :  { %v188_v36 = vsel %vm187_vm3, %v753_v33, 0.0  ;;  %v200_v38 = vmul.f32 0.0, %v753_v33 }
  0xb8   :  { %v202_v41 = vsel %vm187_vm3, %v200_v38, 0.0 }
  0xb9   :  { %v755_v34 = vpop.xlane.xlu0 %46 }
  0xba   :  { %v186_v35 = vmul.f32 0.0, %v755_v34  ;;  %v203_v40 = vsel %vm187_vm3, %v755_v34, 0.0 }
  0xbb   :  { %v204_v42 = vadd.f32 %v203_v40, %v202_v41 }
  0xbc   :  { %v189_v37 = vsel %vm187_vm3, %v186_v35, 0.0 }
  0xbd   :  { %v190_v39 = vadd.f32 %v189_v37, %v188_v36 }
  0xbf   :  { %191 = vadd.xlane.f32.xlu1 %v190_v39 }
  0xc3   :  { %205 = vadd.xlane.f32.xlu1 %v204_v42 }
  0xc6   :  { %v240_v45 = vpop.xlane.xlu0 %239 }
  0xc7   :  { %250 = vadd.xlane.f32.xlu1 %v249_v32  ;;  %v241_v46 = vrot.slane %v240_v45, 4 }
  0xc9   :  { %v242_v48 = vadd.f32 %v241_v46, %v240_v45 }
  0xca   :  { %v262_v47 = vpop.xlane.xlu0 %261 }
  0xcb   :  { %v263_v50 = vrot.slane %v262_v47, 4  ;;  %v243_v53 = vrot.slane %v242_v48, 2 }
  0xcd   :  { %v264_v54 = vadd.f32 %v263_v50, %v262_v47  ;;  %v244_v62 = vadd.f32 %v243_v53, %v242_v48  ;;  %v161_v50 = vlaneseq }
  0xcf   :  { %v265_v60 = vrot.slane %v264_v54, 2  ;;  %v245_v5 = vrot.slane %v244_v62, 1 }
  0xd1   :  { %v266_v6 = vadd.f32 %v265_v60, %v264_v54  ;;  %v246_v11 = vadd.f32 %v245_v5, %v244_v62 }
  0xd3   :  { %v267_v12 = vrot.slane %v266_v6, 1 }
  0xd5   :  { %v268_v15 = vadd.f32 %v267_v12, %v266_v6 }
  0xfa   :  { %129 = vxpose.xlu1.b32.start [1/2] (short) (narrow) %v753_v33, 8 }
  0xfe   :  { %130 = vxpose.xlu1.b32.end [2/2] (short) (narrow) %v755_v34, 8 }
 0x102   :  { %v763_v43 = vpop.f32.mrb[0].mxu0 }
 0x103   :  { %v765_v44 = vpop.f32.mrb[1].mxu0 }
 0x14c   :  { %v192_v49 = vpop.xlane.xlu1 %191 }
 0x14d   :  { %v193_v51 = vrot.slane %v192_v49, 4 }
 0x14f   :  { %v194_v52 = vadd.f32 %v193_v51, %v192_v49  ;;  %v162_v51 = vshrl.u32 %v161_v50, 7 }
 0x150   :  { %v206_v55 = vpop.xlane.xlu1 %205 }
 0x151   :  { %v195_v56 = vrot.slane %v194_v52, 2  ;;  %v207_v57 = vrot.slane %v206_v55, 4 }
 0x153   :  { %v208_v58 = vadd.f32 %v207_v57, %v206_v55  ;;  %v196_v59 = vadd.f32 %v195_v56, %v194_v52  ;;  %v163_v52 = vsub.s32 0, %v162_v51  ;;  %v788_v55 = vand.u32 127, %v161_v50 }
 0x154   :  { %v251_v61 = vpop.xlane.xlu1 %250  ;;  %v167_v57 = vmul.f32 2.0, %v765_v44 }
 0x155   :  { %v209_v63 = vrot.slane %v208_v58, 2  ;;  %v252_v0 = vrot.slane %v251_v61, 4  ;;  %v197_v1 = vrot.slane %v196_v59, 1  ;;  %vm180_vm4 = vcmp.ge.s32.totalorder %v788_v55, 8 }
 0x156   :  { %vm797_vm6 = vmxor %vm701_vm5, %vm180_vm4 }
 0x157   :  { %v253_v2 = vadd.f32 %v252_v0, %v251_v61  ;;  %v198_v3 = vadd.f32 %v197_v1, %v196_v59  ;;  %v210_v4 = vadd.f32 %v209_v63, %v208_v58  ;;  %v168_v59 = vmul.f32 2.0, %v763_v43 }
 0x159   :  { %v254_v7 = vrot.slane %v253_v2, 2  ;;  %541 = vpush %v198_v3  ;;  %v211_v8 = vrot.slane %v210_v4, 1 }
 0x15b   :  { %v212_v9 = vadd.f32 %v211_v8, %v210_v4  ;;  %v255_v10 = vadd.f32 %v254_v7, %v253_v2 }
 0x15d   :  { %543 = vpush %v212_v9  ;;  %v256_v13 = vrot.slane %v255_v10, 1 }
 0x15e   :  { %545 = vpush %v246_v11 }
 0x15f   :  { %v257_v14 = vadd.f32 %v256_v13, %v255_v10 }
 0x161   :  { %547 = vpush %v257_v14 }
 0x162   :  { %549 = vpush %v268_v15 }
 0x17a   :  { %v145_v53 = vpop.trf.xlu1 }
 0x17b   :  { %v164_v54 = vrot.slane %v145_v53, %v163_v52 }
 0x17d   :  { %v165_v56 = vadd.f32 %v164_v54, %v753_v33  ;;  %v166_v58 = vadd.f32 %v164_v54, %v755_v34 }
 0x17f   :  { %v169_v60 = vsub.f32 %v165_v56, %v167_v57  ;;  %v170_v61 = vsub.f32 %v166_v58, %v168_v59 }
 0x181   :  { %v801_v43 = vmax.f32 %v169_v60, 0.0  ;;  %v803_v63 = vmax.f32 %v170_v61, 0.0 }
 0x18a   :  { %s542_s1 = spop %541 }
 0x18b   :  { %s270_s6 = smul.f32 16.0, %s542_s1 }
 0x18c   :  { %s276_s14 = smul.f32 8.0, %s542_s1 }
 0x18e   :  { %s544_s5 = spop %543 }
 0x18f   :  { %s546_s7 = spop %545  ;;  %s273_s8 = smul.f32 16.0, %s544_s5 }
 0x190   :  { %s271_s9 = smul.f32 2.0, %s546_s7 }
 0x191   :  { %s277_s10 = smul.f32 8.0, %s544_s5 }
 0x192   :  { %s548_s11 = spop %547  ;;  %s272_s12 = ssub.f32 %s270_s6, %s271_s9 }
 0x193   :  { %s274_s13 = smul.f32 2.0, %s548_s11  ;;  %s550_s15 = spop %549 }
 0x194   :  { %s283_s16 = smul.f32 0.004166667, %s272_s12  ;;  %s278_s18 = sadd.f32 %s277_s10, %s276_s14 }
 0x195   :  { %s275_s17 = ssub.f32 %s273_s8, %s274_s13  ;;  %s279_s19 = smul.f32 2.0, %s550_s15 }
 0x196   :  { %s767_s20 = smul.f32 0.25, %s283_s16 }
 0x197   :  { %s289_s21 = smul.f32 0.004166667, %s275_s17  ;;  %s280_s22 = ssub.f32 %s278_s18, %s279_s19 }
 0x198   :  { %s313_s23 = sadd.f32 1e-14, %s767_s20  ;;  %s343_s24 = smul.f32 2.0, %s767_s20 }
 0x199   :  { %s771_s25 = smul.f32 0.25, %s289_s21 }
 0x19a   :  { %s295_s26 = smul.f32 0.004166667, %s280_s22  ;;  %v314_v16 = vstv %s313_s23  ;;  %s344_s27 = sadd.f32 1e-14, %s343_s24 }
 0x19b   :  { %589 = vrcp.f32 %v314_v16  ;;  %s318_s28 = sadd.f32 1e-14, %s771_s25  ;;  %s349_s29 = smul.f32 2.0, %s771_s25 }
 0x19c   :  { %s775_s30 = smul.f32 0.25, %s295_s26  ;;  %v345_v17 = vstv %s344_s27 }
 0x19d   :  { %v319_v18 = vstv %s318_s28  ;;  %s350_s3 = sadd.f32 1e-14, %s349_s29  ;;  %s376_s0 = smul.f32 4.0, %s767_s20 }
 0x19e   :  { %591 = vrcp.f32 %v319_v18  ;;  %s323_s4 = sadd.f32 1e-14, %s775_s30  ;;  %s355_s1 = smul.f32 2.0, %s775_s30 }
 0x19f   :  { %593 = vrcp.f32 %v345_v17  ;;  %v351_v19 = vstv %s350_s3  ;;  %s377_s5 = sadd.f32 1e-14, %s376_s0  ;;  %s382_s6 = smul.f32 4.0, %s771_s25 }
 0x1a0   :  { %v324_v20 = vstv %s323_s4  ;;  %595 = vrcp.f32 %v351_v19  ;;  %s356_s7 = sadd.f32 1e-14, %s355_s1  ;;  %s388_s8 = smul.f32 4.0, %s775_s30 }
 0x1a1   :  { %597 = vrcp.f32 %v324_v20  ;;  %v378_v21 = vstv %s377_s5  ;;  %s383_s9 = sadd.f32 1e-14, %s382_s6  ;;  %s409_s10 = smul.f32 8.0, %s767_s20 }
 0x1a2   :  { %v357_v22 = vstv %s356_s7  ;;  %599 = vrcp.f32 %v378_v21  ;;  %s389_s11 = sadd.f32 1e-14, %s388_s8  ;;  %s415_s12 = smul.f32 8.0, %s771_s25 }
 0x1a3   :  { %601 = vrcp.f32 %v357_v22  ;;  %v384_v23 = vstv %s383_s9  ;;  %s410_s13 = sadd.f32 1e-14, %s409_s10  ;;  %s421_s14 = smul.f32 8.0, %s775_s30 }
 0x1a4   :  { %603 = vrcp.f32 %v384_v23  ;;  %v390_v24 = vstv %s389_s11  ;;  %s416_s15 = sadd.f32 1e-14, %s415_s12  ;;  %s442_s16 = smul.f32 16.0, %s767_s20 }
 0x1a5   :  { %v590_v25 = vpop.eup %589  ;;  %605 = vrcp.f32 %v390_v24  ;;  %v411_v26 = vstv %s410_s13  ;;  %s422_s17 = sadd.f32 1e-14, %s421_s14  ;;  %s448_s18 = smul.f32 16.0, %s771_s25 }
 0x1a6   :  { %551 = vpush %v590_v25  ;;  %607 = vrcp.f32 %v411_v26  ;;  %v417_v27 = vstv %s416_s15  ;;  %s443_s19 = sadd.f32 1e-14, %s442_s16  ;;  %s454_s21 = smul.f32 16.0, %s775_s30 }
 0x1a7   :  { %609 = vrcp.f32 %v417_v27  ;;  %v423_v28 = vstv %s422_s17  ;;  %s449_s22 = sadd.f32 1e-14, %s448_s18 }
 0x1a8   :  { %v592_v29 = vpop.eup %591  ;;  %611 = vrcp.f32 %v423_v28  ;;  %v444_v30 = vstv %s443_s19  ;;  %s455_s23 = sadd.f32 1e-14, %s454_s21 }
 0x1a9   :  { %v594_v31 = vpop.eup %593  ;;  %553 = vpush %v592_v29  ;;  %613 = vrcp.f32 %v444_v30  ;;  %v450_v32 = vstv %s449_s22 }
 0x1aa   :  { %v596_v35 = vpop.eup %595  ;;  %615 = vrcp.f32 %v450_v32  ;;  %v456_v36 = vstv %s455_s23 }
 0x1ab   :  { %v598_v37 = vpop.eup %597  ;;  %617 = vrcp.f32 %v456_v36 }
 0x1ac   :  { %v600_v38 = vpop.eup %599  ;;  %555 = vpush %v598_v37 }
 0x1ad   :  { %v602_v39 = vpop.eup %601  ;;  %557 = vpush %v594_v31 }
 0x1ae   :  { %v604_v40 = vpop.eup %603  ;;  %559 = vpush %v596_v35 }
 0x1af   :  { %v606_v41 = vpop.eup %605  ;;  %561 = vpush %v602_v39 }
 0x1b0   :  { %v608_v42 = vpop.eup %607  ;;  %563 = vpush %v600_v38 }
 0x1b1   :  { %v610_v45 = vpop.eup %609  ;;  %565 = vpush %v604_v40 }
 0x1b2   :  { %v612_v46 = vpop.eup %611  ;;  %567 = vpush %v606_v41 }
 0x1b3   :  { %v614_v47 = vpop.eup %613  ;;  %569 = vpush %v608_v42 }
 0x1b4   :  { %v616_v48 = vpop.eup %615  ;;  %571 = vpush %v610_v45 }
 0x1b5   :  { %v618_v49 = vpop.eup %617  ;;  %573 = vpush %v612_v46 }
 0x1b6   :  { %575 = vpush %v614_v47 }
 0x1b7   :  { %577 = vpush %v616_v48 }
 0x1b8   :  { %579 = vpush %v618_v49 }
 0x1d7   :  { %s552_s20 = spop %551 }
 0x1d8   :  { %s317_s26 = smul.f32 -1.0, %s552_s20 }
 0x1da   :  { %s554_s24 = spop %553  ;;  %v329_v44 = vstv %s317_s26  ;;  %s683_s26 = scalar_lea.hbm %s865_s2, 16 }
 0x1db   :  { %s322_s25 = smul.f32 -1.0, %s554_s24  ;;  %p684_p2 = scmp.ne.s32.totalorder %s865_s2, %s683_s26 }
 0x1dc   :  { %p687_p3 = scmp.lt.u32.totalorder %s683_s26, %s865_s2 }
 0x1dd   :  { %s556_s27 = spop %555  ;;  %v332_v34 = vstv %s322_s25 }
 0x1de   :  { %s327_s28 = smul.f32 -1.0, %s556_s27  ;;  %s558_s29 = spop %557 }
 0x1df   :  { %s348_s30 = smul.f32 -1.0, %s558_s29  ;;  %s560_s3 = spop %559 }
 0x1e0   :  { %v328_v62 = vstv %s327_s28  ;;  %s354_s0 = smul.f32 -1.0, %s560_s3  ;;  %s562_s4 = spop %561 }
 0x1e1   :  { %v330_v0 = vsel %vm180_vm4, %v328_v62, %v329_v44  ;;  %v331_v1 = vsel %vm797_vm6, %v328_v62, %v329_v44  ;;  %s360_s1 = smul.f32 -1.0, %s562_s4  ;;  %s564_s5 = spop %563  ;;  %v362_v6 = vstv %s348_s30  ;;  %v702_v44 = vmov 0.015625  }
 0x1e2   :  { %v334_v2 = vsel %vm180_vm4, %v332_v34, %v331_v1  ;;  %v335_v3 = vmul.f32 %v330_v0, %v801_v43  ;;  %v365_v4 = vstv %s354_s0  ;;  %s381_s6 = smul.f32 -1.0, %s564_s5  ;;  %s566_s7 = spop %565  ;;  %v310_v62 = vsel %vm797_vm6, -0.015625, %v702_v44 }
 0x1e3   :  { %v336_v5 = vmul.f32 %v334_v2, %v803_v63  ;;  %v361_v7 = vstv %s360_s1  ;;  %s387_s8 = smul.f32 -1.0, %s566_s7  ;;  %s568_s9 = spop %567  ;;  %v309_v2 = vsel %vm180_vm4, -0.015625, %v702_v44 }
 0x1e4   :  { %v337_v8 = vmul.f32 1.442695, %v335_v3  ;;  %v363_v9 = vsel %vm180_vm4, %v361_v7, %v362_v6  ;;  %v364_v10 = vsel %vm797_vm6, %v361_v7, %v362_v6  ;;  %v395_v11 = vstv %s381_s6  ;;  %s393_s10 = smul.f32 -1.0, %s568_s9  ;;  %s570_s11 = spop %569 }
 0x1e5   :  { %v339_v12 = vmul.f32 1.442695, %v336_v5  ;;  %v367_v13 = vsel %vm180_vm4, %v365_v4, %v364_v10  ;;  %v368_v14 = vmul.f32 %v363_v9, %v801_v43  ;;  %v398_v15 = vstv %s387_s8  ;;  %s414_s12 = smul.f32 -1.0, %s570_s11  ;;  %s572_s13 = spop %571 }
 0x1e6   :  { %619 = vpow2.f32 %v337_v8  ;;  %v369_v16 = vmul.f32 %v367_v13, %v803_v63  ;;  %v394_v17 = vstv %s393_s10  ;;  %s420_s14 = smul.f32 -1.0, %s572_s13  ;;  %s574_s15 = spop %573  ;;  %v312_v4 = vsel %vm180_vm4, 0.015625, %v310_v62 }
 0x1e7   :  { %621 = vpow2.f32 %v339_v12  ;;  %v370_v18 = vmul.f32 1.442695, %v368_v14  ;;  %v396_v19 = vsel %vm180_vm4, %v394_v17, %v395_v11  ;;  %v397_v20 = vsel %vm797_vm6, %v394_v17, %v395_v11  ;;  %s426_s16 = smul.f32 -1.0, %s574_s15  ;;  %s576_s17 = spop %575 }
 0x1e8   :  { %v372_v21 = vmul.f32 1.442695, %v369_v16  ;;  %v400_v22 = vsel %vm180_vm4, %v398_v15, %v397_v20  ;;  %v401_v23 = vmul.f32 %v396_v19, %v801_v43  ;;  %v428_v24 = vstv %s414_s12  ;;  %s447_s18 = smul.f32 -1.0, %s576_s17  ;;  %s578_s19 = spop %577 }
 0x1e9   :  { %623 = vpow2.f32 %v370_v18  ;;  %v402_v25 = vmul.f32 %v400_v22, %v803_v63  ;;  %v431_v26 = vstv %s420_s14  ;;  %v427_v27 = vstv %s426_s16  ;;  %s453_s21 = smul.f32 -1.0, %s578_s19  ;;  %s580_s22 = spop %579 }
 0x1ea   :  { %625 = vpow2.f32 %v372_v21  ;;  %v403_v28 = vmul.f32 1.442695, %v401_v23  ;;  %v429_v29 = vsel %vm180_vm4, %v427_v27, %v428_v24  ;;  %v430_v30 = vsel %vm797_vm6, %v427_v27, %v428_v24  ;;  %s459_s23 = smul.f32 -1.0, %s580_s22  ;;  %p689_p4 = pnand %p687_p3, %p684_p2 }
 0x1eb   :  { %v405_v31 = vmul.f32 1.442695, %v402_v25  ;;  %v433_v32 = vsel %vm180_vm4, %v431_v26, %v430_v30  ;;  %v434_v35 = vmul.f32 %v429_v29, %v801_v43  ;;  %v461_v36 = vstv %s447_s18 }
 0x1ec   :  { %627 = vpow2.f32 %v403_v28  ;;  %v435_v37 = vmul.f32 %v433_v32, %v803_v63  ;;  %v464_v38 = vstv %s453_s21  ;;  %v460_v39 = vstv %s459_s23 }
 0x1ed   :  { %629 = vpow2.f32 %v405_v31  ;;  %v436_v40 = vmul.f32 1.442695, %v434_v35  ;;  %v462_v41 = vsel %vm180_vm4, %v460_v39, %v461_v36  ;;  %v463_v42 = vsel %vm797_vm6, %v460_v39, %v461_v36 }
 0x1ee   :  { %v438_v45 = vmul.f32 1.442695, %v435_v37  ;;  %v466_v46 = vsel %vm180_vm4, %v464_v38, %v463_v42  ;;  %v467_v47 = vmul.f32 %v462_v41, %v801_v43 }
 0x1ef   :  { %631 = vpow2.f32 %v436_v40  ;;  %v468_v48 = vmul.f32 %v466_v46, %v803_v63 }
 0x1f0   :  { %v620_v49 = vpop.eup %619  ;;  %633 = vpow2.f32 %v438_v45  ;;  %v469_v50 = vmul.f32 1.442695, %v467_v47 }
 0x1f1   :  { %v622_v51 = vpop.eup %621  ;;  %v471_v52 = vmul.f32 1.442695, %v468_v48 }
 0x1f2   :  { %635 = vpow2.f32 %v469_v50 }
 0x1f3   :  { %v624_v53 = vpop.eup %623  ;;  %637 = vpow2.f32 %v471_v52 }
 0x1f4   :  { %v626_v54 = vpop.eup %625  ;;  %v374_v56 = vadd.f32 %v624_v53, %v620_v49 }
 0x1f5   :  { %v375_v57 = vadd.f32 %v626_v54, %v622_v51 }
 0x1f6   :  { %v628_v58 = vpop.eup %627 }
 0x1f7   :  { %v630_v59 = vpop.eup %629  ;;  %v407_v60 = vadd.f32 %v628_v58, %v374_v56 }
 0x1f8   :  { %v408_v61 = vadd.f32 %v630_v59, %v375_v57 }
 0x1f9   :  { %v632_v34 = vpop.eup %631 }
 0x1fa   :  { %v634_v43 = vpop.eup %633  ;;  %v440_v63 = vadd.f32 %v632_v34, %v407_v60 }
 0x1fb   :  { %v441_v0 = vadd.f32 %v634_v43, %v408_v61 }
 0x1fc   :  { %v636_v1 = vpop.eup %635 }
 0x1fd   :  { %v638_v3 = vpop.eup %637  ;;  %v473_v5 = vadd.f32 %v636_v1, %v440_v63 }
 0x1fe   :  { %v474_v6 = vadd.f32 %v638_v3, %v441_v0 }
 0x1ff   :  { %v475_v7 = vmul.f32 %v473_v5, %v309_v2 }
 0x200   :  { %v476_v8 = vmul.f32 %v474_v6, %v312_v4 }
 0x201   :  { %v478_v9 = vsel %vm477_vm7, %v475_v7, 0.0 }
 0x202   :  { %v479_v10 = vsel %vm477_vm7, %v476_v8, 0.0 }
 0x203   :  { %v480_v11 = vadd.f32 %v479_v10, %v478_v9 }
 0x205   :  { %481 = vadd.xlane.f32.xlu0 %v480_v11 }
 0x292   :  { %v482_v33 = vpop.xlane.xlu0 %481 }
 0x293   :  { %v483_v12 = vrot.slane %v482_v33, 4 }
 0x295   :  { %v484_v13 = vadd.f32 %v483_v12, %v482_v33 }
 0x297   :  { %v485_v14 = vrot.slane %v484_v13, 2 }
 0x299   :  { %v486_v15 = vadd.f32 %v485_v14, %v484_v13 }
 0x29b   :  { %v487_v16 = vrot.slane %v486_v15, 1 }
 0x29d   :  { %v488_v17 = vadd.f32 %v487_v16, %v486_v15 }
 0x29f   :  { %581 = vpush %v488_v17 }
 0x2d0   :  { %s582_s20 = spop %581 }
 0x2d1   :  { %491 = sst [smem:[#allocation4]] %s582_s20 }
 0x2d2   :  { %692 = shalt.err (!%p689_p4)
}
 0x2d3   :  { %s703_s3 = smov [#allocation4]  }
 0x2d4   :  { %499 = dma.smem_to_hbm %s703_s3, 16, %s865_s2, [#allocation5]  }
 0x2d5   :  { %697 = dma.done.wait [#allocation5], 16  }
 0x2d6   :  { %698 = vsyncadd [#allocation5], 4294967280 }
 0x2d7   :  { %503 = sfence }
 0x2d8   :  { %504 = vsyncpa [#allocation5], 1 }
 0x2d9   :  { %505 = vsyncmov [#allocation3] }
 0x2dc   :  { %s506_s1 = vpop.sfrf %505 }
 0x2dd   :  { %p522_p5 = scmp.ne.s32.totalorder %s506_s1, 0 }
 0x2df   :  { %510 = shalt.err (%p522_p5)  }
 0x2e0   :  { %512 = vsyncmov [#allocation3 + $0x1] }
 0x2e3   :  { %s513_s5 = vpop.sfrf %512 }
 0x2e4   :  { %p523_p6 = scmp.ne.s32.totalorder %s513_s5, 0 }
 0x2e6   :  { %517 = shalt.err (%p523_p6)  }

</bundles_post_ra>
